<compile_context>
chip_gen: v5e
topology: v5e:2x2
jax: 0.10.0
libtpu: 0.0.40
codegen_flags: <defaults>
</compile_context>

<pallas_src>
import functools

import numpy as np
import jax
import jax.numpy as jnp
from jax.experimental import pallas as pl
from jax.experimental.pallas import tpu as pltpu


# ----------------------------------------------------------------------------
# Host-side glue: replicate torch's create_subsequence_mask (stateful geometric
# run-length masking) deterministically with numpy.
# TODO(synk): geometric run-length sampling (data-dependent while-style loop)
#             has no clean Pallas equivalent; kept as host-side mask setup.
# ----------------------------------------------------------------------------
def create_subsequence_mask_np(shape, r=0.15, lm=3, stateful=True, sync=False, rng=None):
    n_masks, mask_dims, mask_len = shape
    if r <= 0:
        return np.zeros(shape, dtype=bool)
    if rng is None:
        rng = np.random.default_rng(0)
    if sync == "random":
        sync = rng.random() > 0.5
    dims = 1 if sync else mask_dims
    if stateful:
        numels = n_masks * dims * mask_len
        pm = 1.0 / lm
        pu = float(np.clip(pm * (r / max(1e-6, 1.0 - r)), 0.001, 1.0))
        if rng.random() > pm:
            zot, proba_a, proba_b = np.array([False, True]), pu, pm
        else:
            zot, proba_a, proba_b = np.array([True, False]), pm, pu
        max_len = max(1, 2 * int(numels // (1.0 / pm + 1.0 / pu)))
        dist_a = dist_b = add = None
        for i in range(10):
            _a = rng.geometric(proba_a, size=max_len).astype(np.int64)
            _b = rng.geometric(proba_b, size=max_len).astype(np.int64)
            dist_a = _a if i == 0 else np.concatenate([dist_a, _a])
            dist_b = _b if i == 0 else np.concatenate([dist_b, _b])
            add = dist_a + dist_b
            if add.sum() > numels:
                break
        dist_len = int(np.argmax((np.cumsum(add) >= numels).astype(np.float32))) + 1
        if dist_len % 2:
            dist_len += 1
        repeats = np.concatenate([dist_a[:dist_len], dist_b[:dist_len]])
        zot_rep = np.tile(zot, dist_len)
        flat = np.repeat(zot_rep, repeats)
        if flat.size < numels:  # safety pad (unreachable for sane params)
            flat = np.concatenate([flat, np.repeat(flat[-1], numels - flat.size)])
        mask = flat[:numels].reshape(n_masks, dims, mask_len)
    else:
        mask = rng.random((n_masks, dims, mask_len)) < r
    if sync:
        mask = np.repeat(mask, mask_dims, axis=1)
    return mask


# ----------------------------------------------------------------------------
# Pallas kernel: per-element standard-dropout hash + mask combine + masked copy
# ----------------------------------------------------------------------------
def _recon_dropout_kernel(seed_ref, y_ref, base_ref, out_ref, *,
                          keep_thresh, total_cols):
    TB, CB = y_ref.shape                       # static block shape
    # int8 mask folded on the wrapper side: 0 = drop, 1 = keep iff standard
    # draw keeps it, 2 = force keep (dropout skipped for this batch row).
    base = base_ref[...].astype(jnp.int32)

    if keep_thresh >= (1 << 23):               # drop_standard == 0: no hashing
        keep = base >= 1
    else:
        seed_u32 = seed_ref[0].astype(jnp.uint32)
        row0 = pl.program_id(0) * TB
        col0 = pl.program_id(1) * CB
        # One counter per element; per-row term formed at (TB, 1) and
        # broadcast-added (hoisted, not recomputed per branch).
        row_base = (jax.lax.broadcasted_iota(jnp.int32, (TB, 1), 0) + row0) * total_cols
        counter = (row_base + col0) + jax.lax.broadcasted_iota(jnp.int32, (TB, CB), 1)
        # lowbias32-style integer hash; low 23 bits vs integer threshold
        # (no float casts / multiplies on the compare path).
        x = counter.astype(jnp.uint32) * jnp.uint32(0x9E3779B1)
        x = x ^ (seed_u32 * jnp.uint32(0x85EBCA77))
        x = x ^ (x >> 16)
        x = x * jnp.uint32(0x7FEB352D)
        x = x ^ (x >> 15)
        x = x * jnp.uint32(0x846CA68B)
        x = x ^ (x >> 16)
        bits = (x & jnp.uint32(0x7FFFFF)).astype(jnp.int32)
        std_keep = bits < keep_thresh
        keep = (base >= 2) | ((base >= 1) & std_keep)

    # Masked copy in y's native dtype (kept elements are bit-exact copies).
    out_ref[...] = jnp.where(keep, y_ref[...], jnp.zeros((), out_ref.dtype))


# ----------------------------------------------------------------------------
# Block / VMEM sizing helpers
# ----------------------------------------------------------------------------
def _round_up(a, b):
    return -(-a // b) * b


def _vmem_capacity_bytes():
    """Physical VMEM per core; conservative v7x-sized fallback (64 MiB)."""
    try:
        info = pltpu.get_tpu_info()
        for attr in ("vmem_capacity_bytes", "vmem_size_bytes", "vmem_bytes"):
            val = getattr(info, attr, None)
            if val:
                return int(val)
    except Exception:
        pass
    return 64 << 20


def _choose_block(batch, ld128, itemsize, budget):
    """Pick (rows, cols).  cols is a multiple of 128 (lane-dense, unmasked
    vst); rows is a multiple of 32 (int8/bf16 native tiles) sized so the
    double-buffered working set (y in + int8 mask + y out) stays within
    `budget`, capped so large batches still give >= 4 grid steps (megacore)."""
    bpe = 2 * (2 * itemsize + 1)          # bytes/elem incl. double buffering
    cols = ld128
    if 32 * cols * bpe > budget:          # tile the lane axis only if needed
        cols = max(128, (budget // (32 * bpe)) // 128 * 128)
        cols = min(cols, ld128)
    rows_vmem = max(32, budget // (cols * bpe))
    rows = min(rows_vmem, max(pl.cdiv(batch, 4), 32))
    rows = max(32, (rows // 32) * 32)
    return rows, cols


# ----------------------------------------------------------------------------
# Wrapper
# ----------------------------------------------------------------------------
def reconstruction_dropout(y, seq_keep, seed, *, drop_full_timesteps,
                           drop_standard, skip_all_drop, training):
    """Forward pass of ReconstructionDropout.

    y:        (B, L, D) float array.
    seq_keep: (B, L, D) int8/bool array, 1 = keep (== 1 - subsequence mask).
    """
    if not (training and skip_all_drop < 1.0):
        return y  # identity path, same as the torch module

    bs, length, dim = y.shape
    ld = length * dim

    # Wrapper-side cheap draws (B*L and B elements) folded into one int8 mask,
    # so the kernel only needs the per-element "standard" hash.
    key = jax.random.PRNGKey(seed)
    k_ft, k_skip = jax.random.split(key)
    ft_keep = jax.random.bernoulli(k_ft, 1.0 - float(drop_full_timesteps),
                                   (bs, length, 1))
    applied = jax.random.bernoulli(k_skip, 1.0 - float(skip_all_drop), (bs, 1, 1))
    base_keep = jnp.logical_and(jnp.asarray(seq_keep) != 0, ft_keep)
    base = jnp.where(applied, base_keep.astype(jnp.int8), jnp.int8(2))

    y2 = y.reshape(bs, ld)
    base2 = base.reshape(bs, ld)

    cap = _vmem_capacity_bytes()
    budget = min(cap // 2, 64 << 20)          # block working-set target
    vmem_limit = int(min(cap * 3 // 4, 96 << 20))

    ld128 = _round_up(ld, 128)
    rows, cols = _choose_block(bs, ld128, jnp.dtype(y.dtype).itemsize, budget)
    ld_pad = _round_up(ld, cols)              # lane-dense, multiple of 128
    bs_pad = _round_up(bs, rows)

    if bs_pad != bs or ld_pad != ld:
        y2 = jnp.pad(y2, ((0, bs_pad - bs), (0, ld_pad - ld)))
        base2 = jnp.pad(base2, ((0, bs_pad - bs), (0, ld_pad - ld)))

    grid = (bs_pad // rows, ld_pad // cols)
    keep_thresh = int(round((1.0 - float(drop_standard)) * (1 << 23)))

    kernel = functools.partial(_recon_dropout_kernel,
                               keep_thresh=keep_thresh, total_cols=ld_pad)
    out2 = pl.pallas_call(
        kernel,
        out_shape=jax.ShapeDtypeStruct((bs_pad, ld_pad), y.dtype),
        grid_spec=pltpu.PrefetchScalarGridSpec(
            num_scalar_prefetch=1,               # seed lives in SMEM
            grid=grid,
            in_specs=[
                pl.BlockSpec((rows, cols), lambda i, j, s: (i, j)),   # y
                pl.BlockSpec((rows, cols), lambda i, j, s: (i, j)),   # int8 mask
            ],
            out_specs=pl.BlockSpec((rows, cols), lambda i, j, s: (i, j)),
        ),
        compiler_params=pltpu.CompilerParams(
            # Counter-based hashing makes every grid step independent, so both
            # axes can be sharded across TensorCores (v7x megacore).
            dimension_semantics=("parallel", "parallel"),
            vmem_limit_bytes=vmem_limit),
    )(jnp.asarray([seed], dtype=jnp.int32), y2, base2)

    return out2[:bs, :ld].reshape(bs, length, dim)


if __name__ == "__main__":
    # Module hyperparameters (chosen so the training path is exercised).
    drop_full_timesteps = 0.1
    drop_standard = 0.1
    drop_seq = 0.2
    drop_max_seq_len = 5
    skip_all_drop = 0.25   # < 1.0 -> dropout path active

    bs, length, dim = 8, 16, 32
    key = jax.random.PRNGKey(0)
    y = jax.random.normal(key, (bs, length, dim), dtype=jnp.float32)
    y_np = np.asarray(y)

    # seq_keep = 1 - create_subsequence_mask(y.transpose(1,2)).transpose(1,2)
    sub = create_subsequence_mask_np(
        (bs, dim, length), r=drop_seq, lm=drop_max_seq_len,
        rng=np.random.default_rng(0))
    seq_keep = jnp.asarray((~np.transpose(sub, (0, 2, 1))).astype(np.int8))
    seq_np = np.asarray(seq_keep) != 0

    # 1) Full dropout path: every element is either kept (bit-exact y) or 0.
    out = jax.block_until_ready(reconstruction_dropout(
        y, seq_keep, seed=0,
        drop_full_timesteps=drop_full_timesteps,
        drop_standard=drop_standard,
        skip_all_drop=skip_all_drop, training=True))
    out_np = np.asarray(out)
    assert out_np.shape == y_np.shape and out_np.dtype == y_np.dtype
    assert np.all((out_np == y_np) | (out_np == 0.0))

    # 2) Deterministic check of the wrapper-side mask folding
    #    (full-timestep + skip_all_drop + subsequence), standard dropout off.
    seed2 = 7
    out2 = jax.block_until_ready(reconstruction_dropout(
        y, seq_keep, seed=seed2,
        drop_full_timesteps=0.3, drop_standard=0.0,
        skip_all_drop=0.5, training=True))
    k_ft, k_skip = jax.random.split(jax.random.PRNGKey(seed2))
    ft = np.asarray(jax.random.bernoulli(k_ft, 0.7, (bs, length, 1)))
    applied = np.asarray(jax.random.bernoulli(k_skip, 0.5, (bs, 1, 1)))
    expect_keep = (seq_np & ft) | (~applied)
    assert np.array_equal(np.asarray(out2), y_np * expect_keep.astype(np.float32))

    # 3) Subsequence-mask-only path (all drop probs 0, dropout always applied).
    out3 = jax.block_until_ready(reconstruction_dropout(
        y, seq_keep, seed=123,
        drop_full_timesteps=0.0, drop_standard=0.0,
        skip_all_drop=0.0, training=True))
    assert np.array_equal(np.asarray(out3), y_np * seq_np.astype(np.float32))

    # 4) Identity path (skip_all_drop == 1.0 or eval) must return y unchanged.
    out4 = jax.block_until_ready(reconstruction_dropout(
        y, seq_keep, seed=0,
        drop_full_timesteps=drop_full_timesteps,
        drop_standard=drop_standard,
        skip_all_drop=1.0, training=True))
    assert np.array_equal(np.asarray(out4), y_np)

    # 5) Keep-rate sanity check of the in-kernel standard-dropout hash.
    ones = jnp.ones((bs, length, dim), jnp.int8)
    out5 = jax.block_until_ready(reconstruction_dropout(
        y, ones, seed=42,
        drop_full_timesteps=0.0, drop_standard=0.5,
        skip_all_drop=0.0, training=True))
    keep_rate = float(np.mean(np.asarray(out5) != 0.0))
    assert abs(keep_rate - 0.5) < 0.1, keep_rate

    print("KERNEL_OK")
</pallas_src>

<mosaic_0001>
module attributes {stable_mosaic.version = 11 : i64} {
  func.func @_recon_dropout_kernel(%arg0: i32, %arg1: i32, %arg2: memref<1xi32, #tpu.memory_space<smem>>, %arg3: memref<32x512xf32, #tpu.memory_space<vmem>>, %arg4: memref<32x512xi8, #tpu.memory_space<vmem>>, %arg5: memref<32x512xf32, #tpu.memory_space<vmem>>) attributes {dimension_semantics = [#tpu.dimension_semantics<parallel>, #tpu.dimension_semantics<parallel>], iteration_bounds = array<i64: 1, 1>, scalar_prefetch = 1 : i64, scratch_operands = 0 : i64, tpu.core_type = #tpu.core_type<tc>, window_params = [{transform_indices = @transform_0, window_bounds = array<i64: 32, 512>}, {transform_indices = @transform_1, window_bounds = array<i64: 32, 512>}, {transform_indices = @transform_2, window_bounds = array<i64: 32, 512>}]} {
    %c0 = arith.constant 0 : index
    %c0_0 = arith.constant 0 : index
    %0 = vector.load %arg4[%c0, %c0_0] : memref<32x512xi8, #tpu.memory_space<vmem>>, vector<32x512xi8>
    %1 = arith.extsi %0 : vector<32x512xi8> to vector<32x512xi32>
    %c0_1 = arith.constant 0 : index
    %2 = memref.load %arg2[%c0_1] : memref<1xi32, #tpu.memory_space<smem>>
    %c32_i32 = arith.constant 32 : i32
    %3 = arith.muli %arg0, %c32_i32 : i32
    %c512_i32 = arith.constant 512 : i32
    %4 = arith.muli %arg1, %c512_i32 : i32
    %5 = tpu.iota {dimensions = array<i32: 0>} : vector<32x1xi32>
    %6 = vector.broadcast %3 : i32 to vector<32x1xi32>
    %7 = arith.addi %5, %6 : vector<32x1xi32>
    %c512_i32_2 = arith.constant 512 : i32
    %8 = vector.broadcast %c512_i32_2 : i32 to vector<32x1xi32>
    %9 = arith.muli %7, %8 : vector<32x1xi32>
    %10 = vector.broadcast %4 : i32 to vector<32x1xi32>
    %11 = arith.addi %9, %10 : vector<32x1xi32>
    %12 = tpu.iota {dimensions = array<i32: 1>} : vector<32x512xi32>
    %13 = vector.broadcast %11 : vector<32x1xi32> to vector<32x512xi32>
    %14 = arith.addi %13, %12 : vector<32x512xi32>
    %c-1640531535_i32 = arith.constant -1640531535 : i32
    %15 = vector.broadcast %c-1640531535_i32 : i32 to vector<32x512xi32>
    %16 = arith.muli %14, %15 : vector<32x512xi32>
    %c-2048144777_i32 = arith.constant -2048144777 : i32
    %17 = arith.muli %2, %c-2048144777_i32 : i32
    %18 = vector.broadcast %17 : i32 to vector<32x512xi32>
    %19 = arith.xori %16, %18 : vector<32x512xi32>
    %c16_i32 = arith.constant 16 : i32
    %20 = vector.broadcast %c16_i32 : i32 to vector<32x512xi32>
    %21 = arith.shrui %19, %20 : vector<32x512xi32>
    %22 = arith.xori %19, %21 : vector<32x512xi32>
    %c2146121005_i32 = arith.constant 2146121005 : i32
    %23 = vector.broadcast %c2146121005_i32 : i32 to vector<32x512xi32>
    %24 = arith.muli %22, %23 : vector<32x512xi32>
    %c15_i32 = arith.constant 15 : i32
    %25 = vector.broadcast %c15_i32 : i32 to vector<32x512xi32>
    %26 = arith.shrui %24, %25 : vector<32x512xi32>
    %27 = arith.xori %24, %26 : vector<32x512xi32>
    %c-2073254261_i32 = arith.constant -2073254261 : i32
    %28 = vector.broadcast %c-2073254261_i32 : i32 to vector<32x512xi32>
    %29 = arith.muli %27, %28 : vector<32x512xi32>
    %c16_i32_3 = arith.constant 16 : i32
    %30 = vector.broadcast %c16_i32_3 : i32 to vector<32x512xi32>
    %31 = arith.shrui %29, %30 : vector<32x512xi32>
    %32 = arith.xori %29, %31 : vector<32x512xi32>
    %c8388607_i32 = arith.constant 8388607 : i32
    %33 = vector.broadcast %c8388607_i32 : i32 to vector<32x512xi32>
    %34 = arith.andi %32, %33 : vector<32x512xi32>
    %c7549747_i32 = arith.constant 7549747 : i32
    %35 = vector.broadcast %c7549747_i32 : i32 to vector<32x512xi32>
    %36 = arith.cmpi slt, %34, %35 : vector<32x512xi32>
    %c2_i32 = arith.constant 2 : i32
    %37 = vector.broadcast %c2_i32 : i32 to vector<32x512xi32>
    %38 = arith.cmpi sge, %1, %37 : vector<32x512xi32>
    %c1_i32 = arith.constant 1 : i32
    %39 = vector.broadcast %c1_i32 : i32 to vector<32x512xi32>
    %40 = arith.cmpi sge, %1, %39 : vector<32x512xi32>
    %41 = arith.andi %40, %36 : vector<32x512xi1>
    %42 = arith.ori %38, %41 : vector<32x512xi1>
    %c0_4 = arith.constant 0 : index
    %c0_5 = arith.constant 0 : index
    %43 = vector.load %arg3[%c0_4, %c0_5] : memref<32x512xf32, #tpu.memory_space<vmem>>, vector<32x512xf32>
    %cst = arith.constant 0.000000e+00 : f32
    %44 = vector.broadcast %cst : f32 to vector<32x512xf32>
    %45 = arith.select %42, %43, %44 : vector<32x512xi1>, vector<32x512xf32>
    %c0_6 = arith.constant 0 : index
    %c0_7 = arith.constant 0 : index
    %46 = vector.load %arg5[%c0_6, %c0_7] : memref<32x512xf32, #tpu.memory_space<vmem>>, vector<32x512xf32>
    tpu.vector_store %arg5[%c0_6, %c0_7], %45 {strides = array<i32>} : memref<32x512xf32, #tpu.memory_space<vmem>>, vector<32x512xf32>,
    return
  }
  func.func @transform_0(%arg0: i32, %arg1: i32, %arg2: memref<1xi32, #tpu.memory_space<smem>>) -> (i32, i32) {
    %c0_i32 = arith.constant 0 : i32
    return %arg0, %arg1 : i32, i32
  }
  func.func @transform_1(%arg0: i32, %arg1: i32, %arg2: memref<1xi32, #tpu.memory_space<smem>>) -> (i32, i32) {
    %c0_i32 = arith.constant 0 : i32
    return %arg0, %arg1 : i32, i32
  }
  func.func @transform_2(%arg0: i32, %arg1: i32, %arg2: memref<1xi32, #tpu.memory_space<smem>>) -> (i32, i32) {
    %c0_i32 = arith.constant 0 : i32
    return %arg0, %arg1 : i32, i32
  }
}

</mosaic_0001>

<bundles_post_ra>
// kernel: tpu_custom_call.1
= control target key start
LH: loop header
LB: loop body
LE: loop exit
PB: predicated region body
PF: predicated region fallthrough
CT: control target
= control target key end

     0   :  { %9 = vsyncpa [#allocation5], 0  ;;  %s812_s0 = inlined_call_operand.<no memory space> [shape: s32[1], index: 0, kind: input, shape index: {}]   ;;  %s813_s1 = inlined_call_operand.hbm [shape: f32[32,512], index: 1, kind: input, shape index: {}]   ;;  %s814_s2 = inlined_call_operand.hbm [shape: s8[32,512], index: 2, kind: input, shape index: {}]   ;;  %s815_s3 = inlined_call_operand.hbm [shape: f32[32,512], index: 3, kind: output, shape index: {}]  }
   0x1   :  { %10 = vsyncpa [#allocation8], 0 }
   0x2   :  { %11 = vsyncpa [#allocation6], 0  ;;  %s16_s14 = sshll.u32 %s813_s1, 4  ;;  %s516_s15 = smov [#allocation4]   ;;  %s17_s14 = int_to_ptr.hbm [resolvable:$true] %s16_s14 }
   0x3   :  { %s18_s16 = sshll.u32 %s516_s15, 4  ;;  %s30_s19 = sshll.u32 %s814_s2, 4  ;;  %s19_s16 = int_to_ptr.vmem [resolvable:$true] %s18_s16  ;;  %s31_s19 = int_to_ptr.hbm [resolvable:$true] %s30_s19 }
   0x4   :  { %s517_s20 = smov 512   ;;  %s518_s21 = smov 32  }
   0x5   :  { %24 = dma.hbm_to_vmem [thread:$0]  %s17_s14, 2048, %s19_s16, [#allocation5], %s517_s20, %s517_s20, %s518_s21  }
   0x6   :  { %s519_s22 = smov [#allocation7]  }
   0x7   :  { %s32_s23 = sshll.u32 %s519_s22, 4  ;;  %s33_s23 = int_to_ptr.vmem [resolvable:$true] %s32_s23 }
   0x8   :  { %35 = dma.hbm_to_vmem [thread:$0]  %s31_s19, 512, %s33_s23, [#allocation8]  }
   0x9   :  { %510 = dma.done.wait [#allocation5], 2048  }
   0xa   :  { %511 = vsyncadd [#allocation5], 4294965248 }
   0xb   :  { %512 = dma.done.wait [#allocation8], 512  }
   0xc   :  { %513 = vsyncadd [#allocation8], 4294966784  ;;  %v67_v0 = vlaneseq  ;;  %s123_s24 = smul.u32 2246822519, %s812_s0  ;;  %v580_v24 = vld [vmem:[#allocation7] sm:$0xff]  ;;  %v585_v29 = vld [vmem:[#allocation7 + $0x8] sm:$0xff] }
   0xd   :  { %v587_v31 = vld [vmem:[#allocation7 + $0x10] sm:$0xff]  ;;  %v48_v36 = vunpack.c.0.s8 %v580_v24  ;;  %v49_v40 = vunpack.c.0.s8 %v585_v29  ;;  %v52_v50 = vunpack.c.1.s8 %v580_v24  ;;  %v609_v59 = vld [vmem:[#allocation7 + $0x18] sm:$0xff]  ;;  %s520_s0 = smov [#allocation9]   ;;  %s419_s28 = sshll.u32 %s815_s3, 4  ;;  %s420_s28 = int_to_ptr.hbm [resolvable:$true] %s419_s28 }
   0xe   :  { %v550_v1 = vshrl.u32 %v67_v0, 7  ;;  %v552_v2 = vand.u32 127, %v67_v0  ;;  %v572_v12 = vstv %s123_s24  ;;  %v50_v46 = vunpack.c.0.s8 %v587_v31  ;;  %s417_s25 = sshll.u32 %s520_s0, 4  ;;  %s418_s25 = int_to_ptr.vmem [resolvable:$true] %s417_s25 }
   0xf   :  { %vm601_vm0 = vcmp.ge.s32.totalorder %v48_v36, 2  ;;  %vm605_vm1 = vcmp.ge.s32.totalorder %v48_v36, 1  ;;  %vm611_vm2 = vcmp.ge.s32.totalorder %v49_v40, 1  ;;  %vm615_vm3 = vcmp.ge.s32.totalorder %v49_v40, 2 }
  0x10   :  { %v77_v3 = vmul.u32 512, %v550_v1  ;;  %v559_v4 = vadd.s32 128, %v552_v2  ;;  %v562_v5 = vadd.s32 256, %v552_v2  ;;  %v565_v6 = vadd.s32 384, %v552_v2 }
  0x11   :  { %v69_v7 = vadd.s32 8, %v550_v1  ;;  %v70_v21 = vadd.s32 16, %v550_v1  ;;  %vm620_vm4 = vcmp.ge.s32.totalorder %v50_v46, 2  ;;  %vm627_vm5 = vcmp.ge.s32.totalorder %v50_v46, 1 }
  0x12   :  { %v91_v8 = vadd.s32 %v552_v2, %v77_v3  ;;  %v92_v9 = vadd.s32 %v559_v4, %v77_v3  ;;  %v93_v10 = vadd.s32 %v562_v5, %v77_v3  ;;  %v94_v11 = vadd.s32 %v565_v6, %v77_v3 }
  0x13   :  { %v574_v17 = vmul.u32 512, %v69_v7  ;;  %v589_v35 = vmul.u32 512, %v70_v21  ;;  %vm633_vm6 = vcmp.ge.s32.totalorder %v52_v50, 2 }
  0x14   :  { %v107_v13 = vmul.u32 2654435761, %v91_v8  ;;  %v108_v14 = vmul.u32 2654435761, %v92_v9  ;;  %v109_v15 = vmul.u32 2654435761, %v93_v10 }
  0x15   :  { %v110_v16 = vmul.u32 2654435761, %v94_v11  ;;  %v95_v27 = vadd.s32 %v552_v2, %v574_v17  ;;  %v96_v39 = vadd.s32 %v559_v4, %v574_v17  ;;  %v97_v55 = vadd.s32 %v562_v5, %v574_v17 }
  0x16   :  { %v125_v18 = vxor.u32 %v572_v12, %v107_v13  ;;  %v126_v19 = vxor.u32 %v572_v12, %v108_v14  ;;  %v127_v20 = vxor.u32 %v572_v12, %v109_v15  ;;  %v51_v15 = vunpack.c.0.s8 %v609_v59 }
  0x17   :  { %v128_v26 = vxor.u32 %v572_v12, %v110_v16  ;;  %v111_v34 = vmul.u32 2654435761, %v95_v27  ;;  %v112_v47 = vmul.u32 2654435761, %v96_v39  ;;  %v113_v11 = vmul.u32 2654435761, %v97_v55 }
  0x18   :  { %v141_v22 = vshrl.u32 %v125_v18, 16  ;;  %v142_v23 = vshrl.u32 %v126_v19, 16  ;;  %v143_v25 = vshrl.u32 %v127_v20, 16  ;;  %v98_v27 = vadd.s32 %v565_v6, %v574_v17  ;;  %v365_v39 = vld [vmem:[#allocation4] sm:$0xff] }
  0x19   :  { %v144_v33 = vshrl.u32 %v128_v26, 16  ;;  %v129_v43 = vxor.u32 %v572_v12, %v111_v34  ;;  %v130_v54 = vxor.u32 %v572_v12, %v112_v47  ;;  %v366_v47 = vld [vmem:[#allocation4 + $0x8] sm:$0xff]  ;;  %vm643_vm10 = vcmp.ge.s32.totalorder %v51_v15, 2 }
  0x1a   :  { %v157_v28 = vxor.u32 %v141_v22, %v125_v18  ;;  %v158_v30 = vxor.u32 %v142_v23, %v126_v19  ;;  %v159_v32 = vxor.u32 %v143_v25, %v127_v20  ;;  %v131_v22 = vxor.u32 %v572_v12, %v113_v11  ;;  %v369_v19 = vld [vmem:[#allocation4 + $0x20] sm:$0xff] }
  0x1b   :  { %v160_v42 = vxor.u32 %v144_v33, %v128_v26  ;;  %v145_v51 = vshrl.u32 %v129_v43, 16  ;;  %v146_v3 = vshrl.u32 %v130_v54, 16  ;;  %v114_v46 = vmul.u32 2654435761, %v98_v27 }
  0x1c   :  { %v173_v37 = vmul.u32 2146121005, %v157_v28  ;;  %v174_v38 = vmul.u32 2146121005, %v158_v30  ;;  %v175_v41 = vmul.u32 2146121005, %v159_v32 }
  0x1d   :  { %v176_v49 = vmul.u32 2146121005, %v160_v42  ;;  %v161_v61 = vxor.u32 %v145_v51, %v129_v43  ;;  %v162_v16 = vxor.u32 %v146_v3, %v130_v54  ;;  %v147_v33 = vshrl.u32 %v131_v22, 16 }
  0x1e   :  { %v189_v44 = vshrl.u32 %v173_v37, 15  ;;  %v190_v45 = vshrl.u32 %v174_v38, 15  ;;  %v191_v48 = vshrl.u32 %v175_v41, 15  ;;  %v132_v57 = vxor.u32 %v572_v12, %v114_v46 }
  0x1f   :  { %v192_v60 = vshrl.u32 %v176_v49, 15  ;;  %v177_v10 = vmul.u32 2146121005, %v161_v61  ;;  %v178_v26 = vmul.u32 2146121005, %v162_v16  ;;  %v163_v17 = vxor.u32 %v147_v33, %v131_v22  ;;  %v370_v33 = vld [vmem:[#allocation4 + $0x28] sm:$0xff] }
  0x20   :  { %v205_v52 = vxor.u32 %v189_v44, %v173_v37  ;;  %v206_v53 = vxor.u32 %v190_v45, %v174_v38  ;;  %v207_v58 = vxor.u32 %v191_v48, %v175_v41  ;;  %vm659_vm14 = vcmp.ge.s32.totalorder %v51_v15, 1 }
  0x21   :  { %v208_v9 = vxor.u32 %v192_v60, %v176_v49  ;;  %v193_v21 = vshrl.u32 %v177_v10, 15  ;;  %v194_v38 = vshrl.u32 %v178_v26, 15  ;;  %v179_v55 = vmul.u32 2146121005, %v163_v17  ;;  %v367_v60 = vld [vmem:[#allocation4 + $0x10] sm:$0xff] }
  0x22   :  { %v221_v62 = vmul.u32 2221713035, %v205_v52  ;;  %v222_v63 = vmul.u32 2221713035, %v206_v53  ;;  %v223_v8 = vmul.u32 2221713035, %v207_v58  ;;  %v53_v52 = vunpack.c.1.s8 %v585_v29 }
  0x23   :  { %v224_v20 = vmul.u32 2221713035, %v208_v9  ;;  %v209_v32 = vxor.u32 %v193_v21, %v177_v10  ;;  %v210_v45 = vxor.u32 %v194_v38, %v178_v26  ;;  %v195_v0 = vshrl.u32 %v179_v55, 15 }
  0x24   :  { %v237_v13 = vshrl.u32 %v221_v62, 16  ;;  %v238_v14 = vshrl.u32 %v222_v63, 16  ;;  %v239_v18 = vshrl.u32 %v223_v8, 16  ;;  %v100_v22 = vadd.s32 %v559_v4, %v589_v35 }
  0x25   :  { %v240_v30 = vshrl.u32 %v224_v20, 16  ;;  %v225_v42 = vmul.u32 2221713035, %v209_v32  ;;  %v226_v54 = vmul.u32 2221713035, %v210_v45  ;;  %v211_v16 = vxor.u32 %v195_v0, %v179_v55 }
  0x26   :  { %v253_v23 = vxor.u32 %v237_v13, %v221_v62  ;;  %v254_v25 = vxor.u32 %v238_v14, %v222_v63  ;;  %v255_v28 = vxor.u32 %v239_v18, %v223_v8  ;;  %v99_v62 = vadd.s32 %v552_v2, %v589_v35  ;;  %v368_v13 = vld [vmem:[#allocation4 + $0x18] sm:$0xff] }
  0x27   :  { %v256_v41 = vxor.u32 %v240_v30, %v224_v20  ;;  %v241_v51 = vshrl.u32 %v225_v42, 16  ;;  %v242_v3 = vshrl.u32 %v226_v54, 16  ;;  %v148_v8 = vshrl.u32 %v132_v57, 16 }
  0x28   :  { %v269_v34 = vand.u32 8388607, %v253_v23  ;;  %v270_v36 = vand.u32 8388607, %v254_v25  ;;  %v271_v40 = vand.u32 8388607, %v255_v28  ;;  %v101_v37 = vadd.s32 %v562_v5, %v589_v35 }
  0x29   :  { %v272_v48 = vand.u32 8388607, %v256_v41  ;;  %v257_v56 = vxor.u32 %v241_v51, %v225_v42  ;;  %v115_v7 = vmul.u32 2654435761, %v99_v62  ;;  %v258_v14 = vxor.u32 %v242_v3, %v226_v54 }
  0x2a   :  { %vm285_vm7 = vcmp.lt.s32.totalorder %v269_v34, 7549747  ;;  %vm637_vm8 = vcmp.lt.s32.totalorder %v270_v36, 7549747  ;;  %vm650_vm12 = vcmp.lt.s32.totalorder %v271_v40, 7549747  ;;  %v164_v18 = vxor.u32 %v148_v8, %v132_v57 }
  0x2b   :  { %vm333_vm9 = vmand %vm605_vm1, %vm285_vm7  ;;  %v273_v10 = vand.u32 8388607, %v257_v56  ;;  %vm683_vm7 = vcmp.ge.s32.totalorder %v53_v52, 2  ;;  %v133_v21 = vxor.u32 %v572_v12, %v115_v7  ;;  %v274_v23 = vand.u32 8388607, %v258_v14  ;;  %v371_v57 = vld [vmem:[#allocation4 + $0x30] sm:$0xff] }
  0x2c   :  { %vm349_vm11 = vmor %vm601_vm0, %vm333_vm9  ;;  %vm667_vm0 = vcmp.lt.s32.totalorder %v272_v48, 7549747  ;;  %vm700_vm9 = vcmp.ge.s32.totalorder %v53_v52, 1  ;;  %v227_v26 = vmul.u32 2221713035, %v211_v16  ;;  %v54_v34 = vunpack.c.1.s8 %v587_v31 }
  0x2d   :  { %v381_v58 = vsel %vm349_vm11, %v365_v39, 0.0  ;;  %vm334_vm13 = vmand %vm611_vm2, %vm637_vm8  ;;  %vm677_vm2 = vcmp.ge.s32.totalorder %v52_v50, 1  ;;  %vm691_vm8 = vcmp.lt.s32.totalorder %v273_v10, 7549747  ;;  %v180_v28 = vmul.u32 2146121005, %v164_v18 }
  0x2e   :  { %397 = vst [vmem:[#allocation9] sm:$0xff] %v381_v58  ;;  %vm350_vm15 = vmor %vm615_vm3, %vm334_vm13  ;;  %v149_v30 = vshrl.u32 %v133_v21, 16  ;;  %v116_v32 = vmul.u32 2654435761, %v100_v22  ;;  %v243_v36 = vshrl.u32 %v227_v26, 16  ;;  %v55_v43 = vunpack.c.1.s8 %v609_v59 }
  0x2f   :  { %v382_v9 = vsel %vm350_vm15, %v366_v47, 0.0  ;;  %vm335_vm1 = vmand %vm627_vm5, %vm650_vm12  ;;  %v196_v39 = vshrl.u32 %v180_v28, 15  ;;  %v117_v17 = vmul.u32 2654435761, %v101_v37  ;;  %v102_v52 = vadd.s32 %v565_v6, %v589_v35 }
  0x30   :  { %398 = vst [vmem:[#allocation9 + $0x8] sm:$0xff] %v382_v9  ;;  %vm351_vm3 = vmor %vm620_vm4, %vm335_vm1  ;;  %v165_v40 = vxor.u32 %v149_v30, %v133_v21  ;;  %v134_v41 = vxor.u32 %v572_v12, %v116_v32  ;;  %v259_v42 = vxor.u32 %v243_v36, %v227_v26  ;;  %vm307_vm15 = vcmp.ge.s32.totalorder %v54_v34, 2  ;;  %v372_v26 = vld [vmem:[#allocation4 + $0x38] sm:$0xff] }
  0x31   :  { %v383_v20 = vsel %vm351_vm3, %v367_v60, 0.0  ;;  %vm336_vm5 = vmand %vm659_vm14, %vm667_vm0  ;;  %v212_v45 = vxor.u32 %v196_v39, %v180_v28  ;;  %vm719_vm14 = vcmp.ge.s32.totalorder %v54_v34, 1  ;;  %v135_v51 = vxor.u32 %v572_v12, %v117_v17 }
  0x32   :  { %399 = vst [vmem:[#allocation9 + $0x10] sm:$0xff] %v383_v20  ;;  %vm352_vm4 = vmor %vm643_vm10, %vm336_vm5  ;;  %vm290_vm10 = vcmp.lt.s32.totalorder %v274_v23, 7549747  ;;  %v181_v46 = vmul.u32 2146121005, %v165_v40  ;;  %v150_v47 = vshrl.u32 %v134_v41, 16  ;;  %v56_v58 = vunpack.c.2.s8 %v580_v24 }
  0x33   :  { %v384_v27 = vsel %vm352_vm4, %v368_v13, 0.0  ;;  %vm337_vm11 = vmand %vm677_vm2, %vm691_vm8  ;;  %v275_v48 = vand.u32 8388607, %v259_v42  ;;  %v228_v53 = vmul.u32 2221713035, %v212_v45  ;;  %v151_v60 = vshrl.u32 %v135_v51, 16 }
  0x34   :  { %400 = vst [vmem:[#allocation9 + $0x18] sm:$0xff] %v384_v27  ;;  %vm353_vm12 = vmor %vm633_vm6, %vm337_vm11  ;;  %v197_v54 = vshrl.u32 %v181_v46, 15  ;;  %v166_v55 = vxor.u32 %v150_v47, %v134_v41  ;;  %v118_v61 = vmul.u32 2654435761, %v102_v52  ;;  %vm729_vm2 = vcmp.ge.s32.totalorder %v55_v43, 2 }
  0x35   :  { %v385_v38 = vsel %vm353_vm12, %v369_v19, 0.0  ;;  %vm338_vm13 = vmand %vm700_vm9, %vm290_vm10  ;;  %vm291_vm0 = vcmp.lt.s32.totalorder %v275_v48, 7549747  ;;  %v244_v56 = vshrl.u32 %v228_v53, 16  ;;  %v167_v0 = vxor.u32 %v151_v60, %v135_v51  ;;  %v374_v60 = vld [vmem:[#allocation4 + $0x48] sm:$0xff] }
  0x36   :  { %401 = vst [vmem:[#allocation9 + $0x20] sm:$0xff] %v385_v38  ;;  %vm354_vm6 = vmor %vm683_vm7, %vm338_vm13  ;;  %v213_v63 = vxor.u32 %v197_v54, %v181_v46  ;;  %v182_v35 = vmul.u32 2146121005, %v166_v55  ;;  %vm733_vm7 = vcmp.ge.s32.totalorder %v55_v43, 1  ;;  %v136_v8 = vxor.u32 %v572_v12, %v118_v61  ;;  %v373_v43 = vld [vmem:[#allocation4 + $0x40] sm:$0xff]  ;;  %v378_v46 = vld [vmem:[#allocation4 + $0x68] sm:$0xff] }
  0x37   :  { %v386_v44 = vsel %vm354_vm6, %v370_v33, 0.0  ;;  %vm339_vm1 = vmand %vm719_vm14, %vm291_vm0  ;;  %v71_v9 = vadd.s32 24, %v550_v1  ;;  %v260_v11 = vxor.u32 %v244_v56, %v228_v53  ;;  %vm739_vm5 = vcmp.ge.s32.totalorder %v56_v58, 2 }
  0x38   :  { %402 = vst [vmem:[#allocation9 + $0x28] sm:$0xff] %v386_v44  ;;  %vm355_vm3 = vmor %vm307_vm15, %vm339_vm1  ;;  %v229_v7 = vmul.u32 2221713035, %v213_v63  ;;  %v198_v13 = vshrl.u32 %v182_v35, 15  ;;  %v183_v15 = vmul.u32 2146121005, %v167_v0  ;;  %v57_v19 = vunpack.c.2.s8 %v585_v29 }
  0x39   :  { %v387_v10 = vsel %vm355_vm3, %v371_v57, 0.0  ;;  %v152_v16 = vshrl.u32 %v136_v8, 16  ;;  %v80_v18 = vmul.u32 512, %v71_v9  ;;  %v276_v20 = vand.u32 8388607, %v260_v11  ;;  %v375_v11 = vld [vmem:[#allocation4 + $0x50] sm:$0xff] }
  0x3a   :  { %403 = vst [vmem:[#allocation9 + $0x30] sm:$0xff] %v387_v10  ;;  %v245_v50 = vshrl.u32 %v229_v7, 16  ;;  %v214_v21 = vxor.u32 %v198_v13, %v182_v35  ;;  %v199_v22 = vshrl.u32 %v183_v15, 15  ;;  %vm746_vm4 = vcmp.ge.s32.totalorder %v56_v58, 1 }
  0x3b   :  { %v168_v23 = vxor.u32 %v152_v16, %v136_v8  ;;  %v103_v1 = vadd.s32 %v552_v2, %v80_v18  ;;  %v104_v25 = vadd.s32 %v559_v4, %v80_v18  ;;  %vm292_vm8 = vcmp.lt.s32.totalorder %v276_v20, 7549747 }
  0x3c   :  { %v261_v27 = vxor.u32 %v245_v50, %v229_v7  ;;  %v230_v30 = vmul.u32 2221713035, %v214_v21  ;;  %vm340_vm9 = vmand %vm733_vm7, %vm292_vm8  ;;  %v215_v32 = vxor.u32 %v199_v22, %v183_v15  ;;  %vm754_vm12 = vcmp.ge.s32.totalorder %v57_v19, 2 }
  0x3d   :  { %v184_v33 = vmul.u32 2146121005, %v168_v23  ;;  %v119_v34 = vmul.u32 2654435761, %v103_v1  ;;  %v120_v36 = vmul.u32 2654435761, %v104_v25  ;;  %vm356_vm11 = vmor %vm729_vm2, %vm340_vm9  ;;  %v58_v38 = vunpack.c.2.s8 %v587_v31 }
  0x3e   :  { %v277_v2 = vand.u32 8388607, %v261_v27  ;;  %v246_v4 = vshrl.u32 %v230_v30, 16  ;;  %v388_v39 = vsel %vm356_vm11, %v372_v26, 0.0  ;;  %v231_v40 = vmul.u32 2221713035, %v215_v32 }
  0x3f   :  { %v200_v41 = vshrl.u32 %v184_v33, 15  ;;  %v137_v42 = vxor.u32 %v572_v12, %v119_v34  ;;  %404 = vst [vmem:[#allocation9 + $0x38] sm:$0xff] %v388_v39  ;;  %v138_v44 = vxor.u32 %v572_v12, %v120_v36  ;;  %v105_v45 = vadd.s32 %v562_v5, %v80_v18  ;;  %v376_v1 = vld [vmem:[#allocation4 + $0x58] sm:$0xff] }
  0x40   :  { %vm293_vm10 = vcmp.lt.s32.totalorder %v277_v2, 7549747  ;;  %v262_v17 = vxor.u32 %v246_v4, %v230_v30  ;;  %vm764_vm6 = vcmp.ge.s32.totalorder %v57_v19, 1  ;;  %v247_v47 = vshrl.u32 %v231_v40, 16 }
  0x41   :  { %vm341_vm13 = vmand %vm746_vm4, %vm293_vm10  ;;  %v216_v48 = vxor.u32 %v200_v41, %v184_v33  ;;  %v153_v49 = vshrl.u32 %v137_v42, 16  ;;  %vm770_vm15 = vcmp.ge.s32.totalorder %v58_v38, 1  ;;  %v154_v53 = vshrl.u32 %v138_v44, 16 }
  0x42   :  { %vm357_vm14 = vmor %vm739_vm5, %vm341_vm13  ;;  %v278_v51 = vand.u32 8388607, %v262_v17  ;;  %v121_v5 = vmul.u32 2654435761, %v105_v45  ;;  %v263_v55 = vxor.u32 %v247_v47, %v231_v40  ;;  %v59_v61 = vunpack.c.2.s8 %v609_v59  ;;  %v377_v17 = vld [vmem:[#allocation4 + $0x60] sm:$0xff] }
  0x43   :  { %v389_v54 = vsel %vm357_vm14, %v373_v43, 0.0  ;;  %v232_v57 = vmul.u32 2221713035, %v216_v48  ;;  %v169_v58 = vxor.u32 %v153_v49, %v137_v42  ;;  %v170_v56 = vxor.u32 %v154_v53, %v138_v44 }
  0x44   :  { %405 = vst [vmem:[#allocation9 + $0x40] sm:$0xff] %v389_v54  ;;  %vm294_vm0 = vcmp.lt.s32.totalorder %v278_v51, 7549747  ;;  %v139_v62 = vxor.u32 %v572_v12, %v121_v5  ;;  %v279_v63 = vand.u32 8388607, %v263_v55  ;;  %v106_v0 = vadd.s32 %v565_v6, %v80_v18  ;;  %v379_v51 = vld [vmem:[#allocation4 + $0x70] sm:$0xff] }
  0x45   :  { %vm342_vm1 = vmand %vm764_vm6, %vm294_vm0  ;;  %v248_v35 = vshrl.u32 %v232_v57, 16  ;;  %v185_v3 = vmul.u32 2146121005, %v169_v58  ;;  %vm311_vm3 = vcmp.ge.s32.totalorder %v58_v38, 2  ;;  %v186_v8 = vmul.u32 2146121005, %v170_v56 }
  0x46   :  { %vm358_vm2 = vmor %vm754_vm12, %vm342_vm1  ;;  %v155_v9 = vshrl.u32 %v139_v62, 16  ;;  %vm295_vm7 = vcmp.lt.s32.totalorder %v279_v63, 7549747  ;;  %v122_v16 = vmul.u32 2654435761, %v106_v0  ;;  %vm783_vm4 = vcmp.ge.s32.totalorder %v59_v61, 2 }
  0x47   :  { %v390_v10 = vsel %vm358_vm2, %v374_v60, 0.0  ;;  %v264_v7 = vxor.u32 %v248_v35, %v232_v57  ;;  %v201_v13 = vshrl.u32 %v185_v3, 15  ;;  %vm343_vm5 = vmand %vm770_vm15, %vm295_vm7  ;;  %v202_v14 = vshrl.u32 %v186_v8, 15  ;;  %v380_v57 = vld [vmem:[#allocation4 + $0x78] sm:$0xff] }
  0x48   :  { %406 = vst [vmem:[#allocation9 + $0x48] sm:$0xff] %v390_v10  ;;  %v171_v15 = vxor.u32 %v155_v9, %v139_v62  ;;  %vm359_vm8 = vmor %vm311_vm3, %vm343_vm5  ;;  %vm787_vm9 = vcmp.ge.s32.totalorder %v59_v61, 1  ;;  %v140_v23 = vxor.u32 %v572_v12, %v122_v16  ;;  %v60_v30 = vunpack.c.3.s8 %v580_v24 }
  0x49   :  { %v280_v6 = vand.u32 8388607, %v264_v7  ;;  %v217_v50 = vxor.u32 %v201_v13, %v185_v3  ;;  %v391_v19 = vsel %vm359_vm8, %v375_v11, 0.0  ;;  %v218_v21 = vxor.u32 %v202_v14, %v186_v8 }
  0x4a   :  { %v187_v22 = vmul.u32 2146121005, %v171_v15  ;;  %407 = vst [vmem:[#allocation9 + $0x50] sm:$0xff] %v391_v19  ;;  %v156_v28 = vshrl.u32 %v140_v23, 16  ;;  %v61_v4 = vunpack.c.3.s8 %v585_v29  ;;  %vm313_vm13 = vcmp.ge.s32.totalorder %v60_v30, 2 }
  0x4b   :  { %vm296_vm11 = vcmp.lt.s32.totalorder %v280_v6, 7549747  ;;  %v233_v25 = vmul.u32 2221713035, %v217_v50  ;;  %v234_v26 = vmul.u32 2221713035, %v218_v21  ;;  %v62_v42 = vunpack.c.3.s8 %v587_v31 }
  0x4c   :  { %vm344_vm12 = vmand %vm787_vm9, %vm296_vm11  ;;  %v203_v27 = vshrl.u32 %v187_v22, 15  ;;  %v172_v12 = vxor.u32 %v156_v28, %v140_v23  ;;  %vm329_vm6 = vcmp.ge.s32.totalorder %v60_v30, 1  ;;  %vm799_vm15 = vcmp.ge.s32.totalorder %v61_v4, 1 }
  0x4d   :  { %vm360_vm10 = vmor %vm783_vm4, %vm344_vm12  ;;  %v249_v32 = vshrl.u32 %v233_v25, 16  ;;  %v250_v34 = vshrl.u32 %v234_v26, 16  ;;  %vm314_vm2 = vcmp.ge.s32.totalorder %v61_v4, 2  ;;  %vm331_vm5 = vcmp.ge.s32.totalorder %v62_v42, 1 }
  0x4e   :  { %v392_v33 = vsel %vm360_vm10, %v376_v1, 0.0  ;;  %v219_v36 = vxor.u32 %v203_v27, %v187_v22  ;;  %v188_v39 = vmul.u32 2146121005, %v172_v12  ;;  %vm315_vm4 = vcmp.ge.s32.totalorder %v62_v42, 2 }
  0x4f   :  { %408 = vst [vmem:[#allocation9 + $0x58] sm:$0xff] %v392_v33  ;;  %v265_v2 = vxor.u32 %v249_v32, %v233_v25  ;;  %v266_v37 = vxor.u32 %v250_v34, %v234_v26  ;;  %v63_v52 = vunpack.c.3.s8 %v609_v59 }
  0x50   :  { %v235_v38 = vmul.u32 2221713035, %v219_v36  ;;  %v204_v24 = vshrl.u32 %v188_v39, 15 }
  0x51   :  { %v281_v40 = vand.u32 8388607, %v265_v2  ;;  %v282_v41 = vand.u32 8388607, %v266_v37  ;;  %vm332_vm10 = vcmp.ge.s32.totalorder %v63_v52, 1 }
  0x52   :  { %v251_v43 = vshrl.u32 %v235_v38, 16  ;;  %v220_v45 = vxor.u32 %v204_v24, %v188_v39 }
  0x53   :  { %vm297_vm14 = vcmp.lt.s32.totalorder %v281_v40, 7549747  ;;  %vm298_vm1 = vcmp.lt.s32.totalorder %v282_v41, 7549747 }
  0x54   :  { %vm345_vm0 = vmand %vm329_vm6, %vm297_vm14  ;;  %v267_v29 = vxor.u32 %v251_v43, %v235_v38  ;;  %v236_v48 = vmul.u32 2221713035, %v220_v45 }
  0x55   :  { %vm361_vm3 = vmor %vm313_vm13, %vm345_vm0  ;;  %vm316_vm13 = vcmp.ge.s32.totalorder %v63_v52, 2 }
  0x56   :  { %v393_v47 = vsel %vm361_vm3, %v377_v17, 0.0  ;;  %vm346_vm7 = vmand %vm799_vm15, %vm298_vm1  ;;  %v283_v31 = vand.u32 8388607, %v267_v29  ;;  %v252_v53 = vshrl.u32 %v236_v48, 16 }
  0x57   :  { %409 = vst [vmem:[#allocation9 + $0x60] sm:$0xff] %v393_v47  ;;  %vm362_vm8 = vmor %vm314_vm2, %vm346_vm7 }
  0x58   :  { %v394_v49 = vsel %vm362_vm8, %v378_v46, 0.0  ;;  %vm299_vm9 = vcmp.lt.s32.totalorder %v283_v31, 7549747  ;;  %v268_v5 = vxor.u32 %v252_v53, %v236_v48 }
  0x59   :  { %410 = vst [vmem:[#allocation9 + $0x68] sm:$0xff] %v394_v49  ;;  %vm347_vm11 = vmand %vm331_vm5, %vm299_vm9 }
  0x5a   :  { %vm363_vm12 = vmor %vm315_vm4, %vm347_vm11  ;;  %v284_v55 = vand.u32 8388607, %v268_v5 }
  0x5b   :  { %v395_v54 = vsel %vm363_vm12, %v379_v51, 0.0 }
  0x5c   :  { %411 = vst [vmem:[#allocation9 + $0x70] sm:$0xff] %v395_v54  ;;  %vm300_vm6 = vcmp.lt.s32.totalorder %v284_v55, 7549747 }
  0x5d   :  { %vm348_vm14 = vmand %vm332_vm10, %vm300_vm6 }
  0x5e   :  { %vm364_vm15 = vmor %vm316_vm13, %vm348_vm14 }
  0x5f   :  { %v396_v59 = vsel %vm364_vm15, %v380_v57, 0.0 }
  0x60   :  { %412 = vst [vmem:[#allocation9 + $0x78] sm:$0xff] %v396_v59 }
  0x61   :  { %425 = dma.vmem_to_hbm [thread:$0]  %s418_s25, 2048, %s420_s28, [#allocation6], %s517_s20, %s517_s20, %s518_s21  }
  0x62   :  { %514 = dma.done.wait [#allocation6], 2048  }
  0x63   :  { %515 = vsyncadd [#allocation6], 4294965248 }
  0x64   :  { %430 = vsyncpa [#allocation5], 1 }
  0x65   :  { %431 = vsyncpa [#allocation8], 1 }
  0x66   :  { %432 = vsyncpa [#allocation6], 1 }

</bundles_post_ra>
